<compile_context>
chip_gen: v7x
topology: tpu7x:2x2x1
jax: 0.10.0
libtpu: 0.0.40
codegen_flags: <defaults>
</compile_context>

<pallas_src>
import jax
import jax.numpy as jnp
from jax.experimental import pallas as pl
from jax.experimental.pallas import tpu as pltpu

NH = 128            # hidden width (capacity = 1/16)
IN_F = 28 * 28      # 784
OUT_PAD = 128       # logits padded 10 -> 128 for lane-dense output stores
BN_EPS = 1e-5


def mlp_kernel(x_ref,
               w1_ref, b1_ref,
               w2_ref, b2_ref,
               w3_ref, b3_ref,
               w4_ref, b4_ref,
               out_ref):
    """(Linear(noBias)·BN-folded -> +shift -> ReLU6) x3 -> Linear(+bias, padded)."""
    # phi1
    h = jnp.dot(x_ref[...], w1_ref[...], preferred_element_type=jnp.float32)
    h = jnp.clip(h + b1_ref[...], 0.0, 6.0).astype(jnp.bfloat16)
    # phi2
    h = jnp.dot(h, w2_ref[...], preferred_element_type=jnp.float32)
    h = jnp.clip(h + b2_ref[...], 0.0, 6.0).astype(jnp.bfloat16)
    # phi3
    h = jnp.dot(h, w3_ref[...], preferred_element_type=jnp.float32)
    h = jnp.clip(h + b3_ref[...], 0.0, 6.0).astype(jnp.bfloat16)
    # phi4 (Linear with bias), N padded to 128 -> unmasked full-lane stores
    out = jnp.dot(h, w4_ref[...], preferred_element_type=jnp.float32)
    out_ref[...] = out + b4_ref[...]


def prepare_params(params):
    """One-time param folding (BN scale into weight columns, bf16 cast, padding)."""
    def fold(w, bn):
        gamma, beta, rmean, rvar = bn
        scale = gamma / jnp.sqrt(rvar + BN_EPS)
        shift = beta - rmean * scale
        w_folded = (w * scale[None, :]).astype(jnp.bfloat16)
        return w_folded, shift[None, :].astype(jnp.float32)

    w1, s1 = fold(params["w1"], params["bn1"])
    w2, s2 = fold(params["w2"], params["bn2"])
    w3, s3 = fold(params["w3"], params["bn3"])

    w4 = jnp.zeros((NH, OUT_PAD), jnp.bfloat16)
    w4 = w4.at[:, :10].set(params["w4"].astype(jnp.bfloat16))
    b4 = jnp.zeros((1, OUT_PAD), jnp.float32)
    b4 = b4.at[0, :10].set(params["bias4"].astype(jnp.float32))
    return (w1, s1, w2, s2, w3, s3, w4, b4)


@jax.jit
def mlp_baseline_forward(x_nchw, folded):
    """Hot path: flatten + pad in XLA, fused MLP in one gridded pallas_call."""
    w1, s1, w2, s2, w3, s3, w4, b4 = folded
    B = x_nchw.shape[0]
    x = x_nchw.reshape(B, IN_F).astype(jnp.bfloat16)

    # Batch tile: multiple of 8 sublanes, capped at 256 rows (fits well under the
    # 32 MiB scoped-VMEM default on v5e/v6e/v7x with all weights resident).
    tile_b = min(256, ((B + 7) // 8) * 8)
    b_pad = ((B + tile_b - 1) // tile_b) * tile_b
    if b_pad != B:
        x = jnp.pad(x, ((0, b_pad - B), (0, 0)))

    grid = (b_pad // tile_b,)

    def resident(shape):
        # Weights / affine shifts: same block every step -> DMA'd once, stay in VMEM.
        return pl.BlockSpec(shape, lambda i: (0, 0))

    flops = 2 * b_pad * (IN_F * NH + NH * NH + NH * NH + NH * OUT_PAD)
    bytes_accessed = (
        x.size * 2 + b_pad * OUT_PAD * 4                       # activations in/out
        + (w1.size + w2.size + w3.size + w4.size) * 2          # bf16 weights
        + (s1.size + s2.size + s3.size + b4.size) * 4          # f32 shifts/bias
    )

    out = pl.pallas_call(
        mlp_kernel,
        out_shape=jax.ShapeDtypeStruct((b_pad, OUT_PAD), jnp.float32),
        grid=grid,
        in_specs=[
            pl.BlockSpec((tile_b, IN_F), lambda i: (i, 0)),    # x: batch-tiled
            resident((IN_F, NH)), resident((1, NH)),
            resident((NH, NH)),   resident((1, NH)),
            resident((NH, NH)),   resident((1, NH)),
            resident((NH, OUT_PAD)), resident((1, OUT_PAD)),
        ],
        out_specs=pl.BlockSpec((tile_b, OUT_PAD), lambda i: (i, 0)),
        compiler_params=pltpu.CompilerParams(
            dimension_semantics=("parallel",),                 # megacore on v7x
            vmem_limit_bytes=32 * 1024 * 1024,
        ),
        cost_estimate=pl.CostEstimate(
            flops=flops, transcendentals=0, bytes_accessed=bytes_accessed),
    )(x, w1, s1, w2, s2, w3, s3, w4, b4)

    return out[:B, :10]


def make_params(key, nh):
    """Deterministic synthetic parameters (shapes match MLPBaseline.__init__)."""
    ks = jax.random.split(key, 20)
    it = iter(range(20))

    def nxt():
        return ks[next(it)]

    def lin_w(fan_in, fan_out):
        # stored as (in, out); equivalent to PyTorch weight.T
        return (jax.random.normal(nxt(), (fan_in, fan_out), jnp.float32)
                * (1.0 / jnp.sqrt(fan_in)))

    def bn_params(n):
        gamma = 1.0 + 0.1 * jax.random.normal(nxt(), (n,), jnp.float32)
        beta = 0.1 * jax.random.normal(nxt(), (n,), jnp.float32)
        rmean = 0.1 * jax.random.normal(nxt(), (n,), jnp.float32)
        rvar = jnp.abs(jax.random.normal(nxt(), (n,), jnp.float32)) + 0.5
        return (gamma, beta, rmean, rvar)

    return {
        "w1": lin_w(IN_F, nh),
        "bn1": bn_params(nh),
        "w2": lin_w(nh, nh),
        "bn2": bn_params(nh),
        "w3": lin_w(nh, nh),
        "bn3": bn_params(nh),
        "w4": lin_w(nh, 10),
        "bias4": 0.01 * jax.random.normal(nxt(), (10,), jnp.float32),
    }


def reference_forward(x_nchw, params):
    """Pure-JAX f32 reference of the same forward pass (for validation)."""
    B = x_nchw.shape[0]
    x = x_nchw.reshape(B, IN_F).astype(jnp.float32)

    def block(h, w, bn):
        gamma, beta, rmean, rvar = bn
        h = h @ w
        h = (h - rmean) / jnp.sqrt(rvar + BN_EPS) * gamma + beta
        return jnp.clip(h, 0.0, 6.0)

    h = block(x, params["w1"], params["bn1"])
    h = block(h, params["w2"], params["bn2"])
    h = block(h, params["w3"], params["bn3"])
    return h @ params["w4"] + params["bias4"]


# TODO(synk): forward(withStats=True) just returns raw weight tensors alongside
# the logits; it is parameter introspection with no kernel-side equivalent.

if __name__ == "__main__":
    capacity = 1.0 / 16.0
    nh = int(2048 * capacity)          # 128
    assert nh == NH

    key = jax.random.PRNGKey(0)
    k_x, k_p = jax.random.split(key)

    B = 8
    x = jax.random.normal(k_x, (B, 1, 28, 28), jnp.float32)   # NCHW, MNIST-like
    params = make_params(k_p, nh)
    folded = prepare_params(params)                           # one-time folding

    out = mlp_baseline_forward(x, folded)
    out = jax.block_until_ready(out)

    ref = reference_forward(x, params)
    assert out.shape == (B, 10)
    # bf16 weights/activations vs f32 reference -> loosened tolerance.
    max_err = float(jnp.max(jnp.abs(out - ref)))
    assert jnp.allclose(out, ref, atol=2.5e-1, rtol=1e-1), max_err

    print("KERNEL_OK")
</pallas_src>

<mosaic_0001>
module attributes {stable_mosaic.version = 11 : i64} {
  func.func @mlp_kernel(%arg0: i32, %arg1: memref<8x784xbf16, #tpu.memory_space<vmem>>, %arg2: memref<784x128xbf16, #tpu.memory_space<vmem>>, %arg3: memref<1x128xf32, #tpu.memory_space<vmem>>, %arg4: memref<128x128xbf16, #tpu.memory_space<vmem>>, %arg5: memref<1x128xf32, #tpu.memory_space<vmem>>, %arg6: memref<128x128xbf16, #tpu.memory_space<vmem>>, %arg7: memref<1x128xf32, #tpu.memory_space<vmem>>, %arg8: memref<128x128xbf16, #tpu.memory_space<vmem>>, %arg9: memref<1x128xf32, #tpu.memory_space<vmem>>, %arg10: memref<8x128xf32, #tpu.memory_space<vmem>>) attributes {dimension_semantics = [#tpu.dimension_semantics<parallel>], iteration_bounds = array<i64: 1>, scalar_prefetch = 0 : i64, scratch_operands = 0 : i64, tpu.core_type = #tpu.core_type<tc>, window_params = [{transform_indices = @transform_0, window_bounds = array<i64: 8, 784>}, {pipeline_mode = #tpu.pipeline_mode<synchronous>, transform_indices = @transform_1, window_bounds = array<i64: 784, 128>}, {pipeline_mode = #tpu.pipeline_mode<synchronous>, transform_indices = @transform_2, window_bounds = array<i64: 1, 128>}, {pipeline_mode = #tpu.pipeline_mode<synchronous>, transform_indices = @transform_3, window_bounds = array<i64: 128, 128>}, {pipeline_mode = #tpu.pipeline_mode<synchronous>, transform_indices = @transform_4, window_bounds = array<i64: 1, 128>}, {pipeline_mode = #tpu.pipeline_mode<synchronous>, transform_indices = @transform_5, window_bounds = array<i64: 128, 128>}, {pipeline_mode = #tpu.pipeline_mode<synchronous>, transform_indices = @transform_6, window_bounds = array<i64: 1, 128>}, {pipeline_mode = #tpu.pipeline_mode<synchronous>, transform_indices = @transform_7, window_bounds = array<i64: 128, 128>}, {pipeline_mode = #tpu.pipeline_mode<synchronous>, transform_indices = @transform_8, window_bounds = array<i64: 1, 128>}, {transform_indices = @transform_9, window_bounds = array<i64: 8, 128>}]} {
    %c0 = arith.constant 0 : index
    %c0_0 = arith.constant 0 : index
    %0 = vector.load %arg1[%c0, %c0_0] : memref<8x784xbf16, #tpu.memory_space<vmem>>, vector<8x784xbf16>
    %c0_1 = arith.constant 0 : index
    %c0_2 = arith.constant 0 : index
    %1 = vector.load %arg2[%c0_1, %c0_2] : memref<784x128xbf16, #tpu.memory_space<vmem>>, vector<784x128xbf16>
    %cst = arith.constant dense<0.000000e+00> : vector<8x128xf32>
    %2 = tpu.matmul %0, %1, %cst {dimension_numbers = #tpu.dot_dimension_numbers<[1], [0], [0], [1], [0, 0, 1, 1], [], []>} : vector<8x784xbf16>, vector<784x128xbf16>, vector<8x128xf32> -> vector<8x128xf32>
    %c0_3 = arith.constant 0 : index
    %c0_4 = arith.constant 0 : index
    %3 = vector.load %arg3[%c0_3, %c0_4] : memref<1x128xf32, #tpu.memory_space<vmem>>, vector<1x128xf32>
    %4 = vector.broadcast %3 : vector<1x128xf32> to vector<8x128xf32>
    %5 = arith.addf %2, %4 : vector<8x128xf32>
    %cst_5 = arith.constant 0.000000e+00 : f32
    %cst_6 = arith.constant 6.000000e+00 : f32
    %6 = vector.broadcast %cst_5 : f32 to vector<8x128xf32>
    %7 = arith.maximumf %6, %5 : vector<8x128xf32>
    %8 = vector.broadcast %cst_6 : f32 to vector<8x128xf32>
    %9 = arith.minimumf %8, %7 : vector<8x128xf32>
    %10 = arith.truncf %9 : vector<8x128xf32> to vector<8x128xbf16>
    %c0_7 = arith.constant 0 : index
    %c0_8 = arith.constant 0 : index
    %11 = vector.load %arg4[%c0_7, %c0_8] : memref<128x128xbf16, #tpu.memory_space<vmem>>, vector<128x128xbf16>
    %cst_9 = arith.constant dense<0.000000e+00> : vector<8x128xf32>
    %12 = tpu.matmul %10, %11, %cst_9 {dimension_numbers = #tpu.dot_dimension_numbers<[1], [0], [0], [1], [0, 0, 1, 1], [], []>} : vector<8x128xbf16>, vector<128x128xbf16>, vector<8x128xf32> -> vector<8x128xf32>
    %c0_10 = arith.constant 0 : index
    %c0_11 = arith.constant 0 : index
    %13 = vector.load %arg5[%c0_10, %c0_11] : memref<1x128xf32, #tpu.memory_space<vmem>>, vector<1x128xf32>
    %14 = vector.broadcast %13 : vector<1x128xf32> to vector<8x128xf32>
    %15 = arith.addf %12, %14 : vector<8x128xf32>
    %cst_12 = arith.constant 0.000000e+00 : f32
    %cst_13 = arith.constant 6.000000e+00 : f32
    %16 = vector.broadcast %cst_12 : f32 to vector<8x128xf32>
    %17 = arith.maximumf %16, %15 : vector<8x128xf32>
    %18 = vector.broadcast %cst_13 : f32 to vector<8x128xf32>
    %19 = arith.minimumf %18, %17 : vector<8x128xf32>
    %20 = arith.truncf %19 : vector<8x128xf32> to vector<8x128xbf16>
    %c0_14 = arith.constant 0 : index
    %c0_15 = arith.constant 0 : index
    %21 = vector.load %arg6[%c0_14, %c0_15] : memref<128x128xbf16, #tpu.memory_space<vmem>>, vector<128x128xbf16>
    %cst_16 = arith.constant dense<0.000000e+00> : vector<8x128xf32>
    %22 = tpu.matmul %20, %21, %cst_16 {dimension_numbers = #tpu.dot_dimension_numbers<[1], [0], [0], [1], [0, 0, 1, 1], [], []>} : vector<8x128xbf16>, vector<128x128xbf16>, vector<8x128xf32> -> vector<8x128xf32>
    %c0_17 = arith.constant 0 : index
    %c0_18 = arith.constant 0 : index
    %23 = vector.load %arg7[%c0_17, %c0_18] : memref<1x128xf32, #tpu.memory_space<vmem>>, vector<1x128xf32>
    %24 = vector.broadcast %23 : vector<1x128xf32> to vector<8x128xf32>
    %25 = arith.addf %22, %24 : vector<8x128xf32>
    %cst_19 = arith.constant 0.000000e+00 : f32
    %cst_20 = arith.constant 6.000000e+00 : f32
    %26 = vector.broadcast %cst_19 : f32 to vector<8x128xf32>
    %27 = arith.maximumf %26, %25 : vector<8x128xf32>
    %28 = vector.broadcast %cst_20 : f32 to vector<8x128xf32>
    %29 = arith.minimumf %28, %27 : vector<8x128xf32>
    %30 = arith.truncf %29 : vector<8x128xf32> to vector<8x128xbf16>
    %c0_21 = arith.constant 0 : index
    %c0_22 = arith.constant 0 : index
    %31 = vector.load %arg8[%c0_21, %c0_22] : memref<128x128xbf16, #tpu.memory_space<vmem>>, vector<128x128xbf16>
    %cst_23 = arith.constant dense<0.000000e+00> : vector<8x128xf32>
    %32 = tpu.matmul %30, %31, %cst_23 {dimension_numbers = #tpu.dot_dimension_numbers<[1], [0], [0], [1], [0, 0, 1, 1], [], []>} : vector<8x128xbf16>, vector<128x128xbf16>, vector<8x128xf32> -> vector<8x128xf32>
    %c0_24 = arith.constant 0 : index
    %c0_25 = arith.constant 0 : index
    %33 = vector.load %arg9[%c0_24, %c0_25] : memref<1x128xf32, #tpu.memory_space<vmem>>, vector<1x128xf32>
    %34 = vector.broadcast %33 : vector<1x128xf32> to vector<8x128xf32>
    %35 = arith.addf %32, %34 : vector<8x128xf32>
    %c0_26 = arith.constant 0 : index
    %c0_27 = arith.constant 0 : index
    %36 = vector.load %arg10[%c0_26, %c0_27] : memref<8x128xf32, #tpu.memory_space<vmem>>, vector<8x128xf32>
    tpu.vector_store %arg10[%c0_26, %c0_27], %35 {strides = array<i32>} : memref<8x128xf32, #tpu.memory_space<vmem>>, vector<8x128xf32>,
    return
  }
  func.func @transform_0(%arg0: i32) -> (i32, i32) {
    %c0_i32 = arith.constant 0 : i32
    %c0_i32_0 = arith.constant 0 : i32
    return %arg0, %c0_i32 : i32, i32
  }
  func.func @transform_1(%arg0: i32) -> (i32, i32) {
    %c0_i32 = arith.constant 0 : i32
    %c0_i32_0 = arith.constant 0 : i32
    %c0_i32_1 = arith.constant 0 : i32
    return %c0_i32, %c0_i32_0 : i32, i32
  }
  func.func @transform_2(%arg0: i32) -> (i32, i32) {
    %c0_i32 = arith.constant 0 : i32
    %c0_i32_0 = arith.constant 0 : i32
    %c0_i32_1 = arith.constant 0 : i32
    return %c0_i32, %c0_i32_0 : i32, i32
  }
  func.func @transform_3(%arg0: i32) -> (i32, i32) {
    %c0_i32 = arith.constant 0 : i32
    %c0_i32_0 = arith.constant 0 : i32
    %c0_i32_1 = arith.constant 0 : i32
    return %c0_i32, %c0_i32_0 : i32, i32
  }
  func.func @transform_4(%arg0: i32) -> (i32, i32) {
    %c0_i32 = arith.constant 0 : i32
    %c0_i32_0 = arith.constant 0 : i32
    %c0_i32_1 = arith.constant 0 : i32
    return %c0_i32, %c0_i32_0 : i32, i32
  }
  func.func @transform_5(%arg0: i32) -> (i32, i32) {
    %c0_i32 = arith.constant 0 : i32
    %c0_i32_0 = arith.constant 0 : i32
    %c0_i32_1 = arith.constant 0 : i32
    return %c0_i32, %c0_i32_0 : i32, i32
  }
  func.func @transform_6(%arg0: i32) -> (i32, i32) {
    %c0_i32 = arith.constant 0 : i32
    %c0_i32_0 = arith.constant 0 : i32
    %c0_i32_1 = arith.constant 0 : i32
    return %c0_i32, %c0_i32_0 : i32, i32
  }
  func.func @transform_7(%arg0: i32) -> (i32, i32) {
    %c0_i32 = arith.constant 0 : i32
    %c0_i32_0 = arith.constant 0 : i32
    %c0_i32_1 = arith.constant 0 : i32
    return %c0_i32, %c0_i32_0 : i32, i32
  }
  func.func @transform_8(%arg0: i32) -> (i32, i32) {
    %c0_i32 = arith.constant 0 : i32
    %c0_i32_0 = arith.constant 0 : i32
    %c0_i32_1 = arith.constant 0 : i32
    return %c0_i32, %c0_i32_0 : i32, i32
  }
  func.func @transform_9(%arg0: i32) -> (i32, i32) {
    %c0_i32 = arith.constant 0 : i32
    %c0_i32_0 = arith.constant 0 : i32
    return %arg0, %c0_i32 : i32, i32
  }
}

</mosaic_0001>

<bundles_post_ra>
// kernel: mlp_baseline_forward.1
= control target key start
LH: loop header
LB: loop body
LE: loop exit
PB: predicated region body
PF: predicated region fallthrough
CT: control target
= control target key end

     0   :  { %14 = vsyncpa [#allocation3], 0  ;;  %s1709_s0 = inlined_call_operand.vmem [shape: bf16[8,784], index: 0, kind: input, shape index: {}]   ;;  %s1710_s1 = inlined_call_operand.vmem [shape: bf16[784,128], index: 1, kind: input, shape index: {}]   ;;  %s1711_s2 = inlined_call_operand.vmem [shape: f32[1,128], index: 2, kind: input, shape index: {}]   ;;  %s1712_s3 = inlined_call_operand.vmem [shape: bf16[128,128], index: 3, kind: input, shape index: {}]   ;;  %s1713_s4 = inlined_call_operand.vmem [shape: f32[1,128], index: 4, kind: input, shape index: {}]   ;;  %s1714_s5 = inlined_call_operand.vmem [shape: bf16[128,128], index: 5, kind: input, shape index: {}]   ;;  %s1715_s6 = inlined_call_operand.vmem [shape: f32[1,128], index: 6, kind: input, shape index: {}]   ;;  %s1716_s7 = inlined_call_operand.hbm [shape: bf16[128,128], index: 7, kind: input, shape index: {}]   ;;  %s1717_s8 = inlined_call_operand.vmem [shape: f32[1,128], index: 8, kind: input, shape index: {}]   ;;  %s1718_s9 = inlined_call_operand.hbm [shape: f32[8,128], index: 9, kind: output, shape index: {}]  }
   0x1   :  { %15 = vsyncpa [#allocation4], 0  ;;  %s1377_s30 = smov [#allocation2]   ;;  %s1329_s13 = scalar_lea.hbm %s1716_s7, 1024 }
   0x2   :  { %s35_s10 = sshll.u32 %s1377_s30, 4  ;;  %p1330_p0 = scmp.ne.s32.totalorder %s1716_s7, %s1329_s13  ;;  %s36_s10 = int_to_ptr.vmem [resolvable:$true] %s35_s10 }
   0x3   :  { %p1333_p1 = scmp.lt.u32.totalorder %s1329_s13, %s1716_s7 }
   0x5   :  { %p1335_p2 = pnand %p1333_p1, %p1330_p0 }
   0x7   :  { %1338 = shalt.err (!%p1335_p2)
}
   0x8   :  { %s1339_s18 = scalar_lea.vmem %s36_s10, 1024  ;;  %p1344_p4 = scmp.lt.s32.totalorder %s36_s10, %s36_s10 }
   0x9   :  { %p1340_p3 = scmp.ne.s32.totalorder %s36_s10, %s1339_s18  ;;  %p1345_p5 = scmp.lt.s32.totalorder %s1339_s18, %s1339_s18 }
   0xb   :  { %p1346_p6 = por %p1345_p5, %p1344_p4 }
   0xd   :  { %p1347_p7 = pnand %p1346_p6, %p1340_p3 }
   0xf   :  { %1350 = shalt.err (!%p1347_p7)
}
  0x10   :  { %s1378_s19 = smov 64   ;;  %s1379_s20 = smov 4  }
  0x11   :  { %41 = dma.hbm_to_vmem [thread:$0]  %s1716_s7, 1024, %s36_s10, [#allocation3], %s1378_s19, %s1378_s19, %s1379_s20  }
  0x12   :  { %1373 = dma.done.wait [#allocation3], 1024  }
  0x13   :  { %1374 = vsyncadd [#allocation3], 4294966272  ;;  %v1249_v0 = vld [vmem:[%s1710_s1 + $0x40] sm:$0xff]   ;;  %v1253_v4 = vld [vmem:[%s1710_s1 + $0x48] sm:$0xff]   ;;  %v1380_v43 = vmov 0.0   ;;  %vm1381_vm0 = vmmov 0  }
  0x14   :  { %v1250_v1 = vld [vmem:[%s1710_s1] sm:$0xff]   ;;  %1082 = vmatprep.subr.bf16.mxu0 %v1249_v0  ;;  %v1254_v5 = vld [vmem:[%s1710_s1 + $0x8] sm:$0xff]   ;;  %v1257_v8 = vld [vmem:[%s1710_s1 + $0x50] sm:$0xff]   ;;  %vm475_vm1 = vcmask 130048   ;;  %s1382_s29 = smov [#allocation5]  }
  0x15   :  { %v1251_v2 = vld [vmem:[%s1710_s1 + $0xc0] sm:$0xff]   ;;  %1083 = vmatpush3.bf16.msra.mxu0 %v1250_v1  ;;  %v1255_v6 = vld [vmem:[%s1710_s1 + $0xc8] sm:$0xff]   ;;  %v1258_v9 = vld [vmem:[%s1710_s1 + $0x10] sm:$0xff]   ;;  %s988_s30 = sshll.u32 %s1382_s29, 4  ;;  %s989_s30 = int_to_ptr.vmem [resolvable:$true] %s988_s30 }
  0x16   :  { %v1252_v3 = vld [vmem:[%s1710_s1 + $0x80] sm:$0xff]   ;;  %1104 = vmatprep.subr.bf16.mxu1 %v1251_v2  ;;  %1084 = vmatprep.subr.bf16.mxu0 %v1253_v4  ;;  %v1256_v7 = vld [vmem:[%s1710_s1 + $0x88] sm:$0xff]   ;;  %v1259_v10 = vld [vmem:[%s1710_s1 + $0xd0] sm:$0xff]   ;;  %p1356_p9 = scmp.lt.s32.totalorder %s989_s30, %s989_s30 }
  0x17   :  { %1105 = vmatpush3.bf16.msra.mxu1 %v1252_v3  ;;  %v1260_v11 = vld [vmem:[%s1710_s1 + $0x90] sm:$0xff]   ;;  %v1261_v12 = vld [vmem:[%s1710_s1 + $0x58] sm:$0xff]   ;;  %v1265_v16 = vld [vmem:[%s1710_s1 + $0x60] sm:$0xff]  }
  0x18   :  { %1106 = vmatprep.subr.bf16.mxu1 %v1255_v6  ;;  %v1262_v13 = vld [vmem:[%s1710_s1 + $0x18] sm:$0xff]   ;;  %v1266_v17 = vld [vmem:[%s1710_s1 + $0x20] sm:$0xff]   ;;  %v1269_v20 = vld [vmem:[%s1710_s1 + $0x68] sm:$0xff]  }
  0x19   :  { %1085 = vmatpush3.bf16.msra.mxu0 %v1254_v5  ;;  %v1263_v14 = vld [vmem:[%s1710_s1 + $0xd8] sm:$0xff]   ;;  %v1267_v18 = vld [vmem:[%s1710_s1 + $0xe0] sm:$0xff]   ;;  %v1270_v21 = vld [vmem:[%s1710_s1 + $0x28] sm:$0xff]  }
  0x1a   :  { %1086 = vmatprep.subr.bf16.mxu0 %v1257_v8  ;;  %v1264_v15 = vld [vmem:[%s1710_s1 + $0x98] sm:$0xff]   ;;  %v1268_v19 = vld [vmem:[%s1710_s1 + $0xa0] sm:$0xff]   ;;  %v1271_v22 = vld [vmem:[%s1710_s1 + $0xe8] sm:$0xff]  }
  0x1b   :  { %1107 = vmatpush3.bf16.msra.mxu1 %v1256_v7  ;;  %v1272_v23 = vld [vmem:[%s1710_s1 + $0xa8] sm:$0xff]   ;;  %v1273_v24 = vld [vmem:[%s1710_s1 + $0x70] sm:$0xff]   ;;  %v1277_v28 = vld [vmem:[%s1710_s1 + $0x78] sm:$0xff]  }
  0x1c   :  { %1108 = vmatprep.subr.bf16.mxu1 %v1259_v10  ;;  %v1274_v25 = vld [vmem:[%s1710_s1 + $0x30] sm:$0xff]   ;;  %v1278_v29 = vld [vmem:[%s1710_s1 + $0x38] sm:$0xff]   ;;  %v48_v31 = vld [vmem:[%s1709_s0] sm:$0xff] }
  0x1d   :  { %1087 = vmatpush3.bf16.msra.mxu0 %v1258_v9  ;;  %v1275_v26 = vld [vmem:[%s1710_s1 + $0xf0] sm:$0xff]   ;;  %v1279_v30 = vld [vmem:[%s1710_s1 + $0xf8] sm:$0xff]   ;;  %v998_v32 = vcombine.low %v48_v31, %v48_v31  ;;  %v999_v33 = vcombine.high %v48_v31, %v48_v31  ;;  %v1283_v35 = vld [vmem:[%s1710_s1 + $0x140] sm:$0xff]  }
  0x1e   :  { %1088 = vmatprep.subr.bf16.mxu0 %v1261_v12  ;;  %v1276_v27 = vld [vmem:[%s1710_s1 + $0xb0] sm:$0xff]   ;;  %v1282_v34 = vld [vmem:[%s1710_s1 + $0xb8] sm:$0xff]   ;;  %v49_v36 = vld [vmem:[%s1709_s0 + $0x8] sm:$0xff] }
  0x1f   :  { %1109 = vmatpush3.bf16.msra.mxu1 %v1260_v11  ;;  %511 = vmatprep.mubr.bf16.mxu0 %v999_v33  ;;  %v1000_v37 = vcombine.low %v49_v36, %v49_v36  ;;  %v1001_v38 = vcombine.high %v49_v36, %v49_v36  ;;  %v1286_v39 = vld [vmem:[%s1710_s1 + $0x100] sm:$0xff]   ;;  %v1287_v40 = vld [vmem:[%s1710_s1 + $0x148] sm:$0xff]   ;;  %v1289_v42 = vld [vmem:[%s1710_s1 + $0x150] sm:$0xff]  }
  0x20   :  { %1110 = vmatprep.subr.bf16.mxu1 %v1263_v14  ;;  %v1288_v41 = vld [vmem:[%s1710_s1 + $0x108] sm:$0xff]   ;;  %v1290_v44 = vld [vmem:[%s1710_s1 + $0x110] sm:$0xff]   ;;  %v1291_v45 = vld [vmem:[%s1710_s1 + $0x158] sm:$0xff]  }
  0x21   :  { %1089 = vmatpush3.bf16.msra.mxu0 %v1262_v13  ;;  %551 = vmatprep.mubr.bf16.mxu1 %v1001_v38  ;;  %v1292_v46 = vld [vmem:[%s1710_s1 + $0x118] sm:$0xff]   ;;  %v1293_v47 = vld [vmem:[%s1710_s1 + $0x160] sm:$0xff]   ;;  %v1295_v49 = vld [vmem:[%s1710_s1 + $0x168] sm:$0xff]  }
  0x22   :  { %1090 = vmatprep.subr.bf16.mxu0 %v1265_v16  ;;  %v1294_v48 = vld [vmem:[%s1710_s1 + $0x120] sm:$0xff]   ;;  %v50_v51 = vld [vmem:[%s1709_s0 + $0x10] sm:$0xff]  ;;  %v1296_v52 = vld [vmem:[%s1710_s1 + $0x128] sm:$0xff]  }
  0x23   :  { %1111 = vmatpush3.bf16.msra.mxu1 %v1264_v15  ;;  %v1301_v50 = vld [vmem:[%s1710_s1 + $0x180] sm:$0xff]   ;;  %v1003_v53 = vcombine.high %v50_v51, %v50_v51  ;;  %v1304_v54 = vld [vmem:[%s1709_s0 + $0x18] ss:$0 sps:$4 sm:$0xff]   ;;  %v1297_v55 = vld [vmem:[%s1710_s1 + $0x170] sm:$0xff]   ;;  %v1002_v59 = vcombine.low %v50_v51, %v50_v51 }
  0x24   :  { %1112 = vmatprep.subr.bf16.mxu1 %v1267_v18  ;;  %v1298_v56 = vld [vmem:[%s1710_s1 + $0x130] sm:$0xff]   ;;  %v1299_v57 = vld [vmem:[%s1710_s1 + $0x178] sm:$0xff]   ;;  %v1305_v60 = vld [vmem:[%s1712_s3] sm:$0xff]  }
  0x25   :  { %1091 = vmatpush3.bf16.msra.mxu0 %v1266_v17  ;;  %v1300_v58 = vld [vmem:[%s1710_s1 + $0x138] sm:$0xff]   ;;  %v1306_v61 = vld [vmem:[%s1712_s3 + $0x8] sm:$0xff]   ;;  %v1307_v62 = vld [vmem:[%s1712_s3 + $0x10] sm:$0xff]  }
  0x26   :  { %1092 = vmatprep.subr.bf16.mxu0 %v1269_v20  ;;  %v1308_v63 = vld [vmem:[%s1712_s3 + $0x18] sm:$0xff]   ;;  %v1309_v0 = vld [vmem:[%s1712_s3 + $0x20] sm:$0xff]   ;;  %v1310_v1 = vld [vmem:[%s1712_s3 + $0x28] sm:$0xff]  }
  0x27   :  { %1113 = vmatpush3.bf16.msra.mxu1 %v1268_v19  ;;  %v1311_v2 = vld [vmem:[%s1712_s3 + $0x30] sm:$0xff]   ;;  %v1312_v3 = vld [vmem:[%s1712_s3 + $0x38] sm:$0xff]   ;;  %v1313_v4 = vld [vmem:[%s1714_s5] sm:$0xff]  }
  0x28   :  { %1114 = vmatprep.subr.bf16.mxu1 %v1271_v22  ;;  %v1314_v5 = vld [vmem:[%s1714_s5 + $0x8] sm:$0xff]   ;;  %v1315_v6 = vld [vmem:[%s1714_s5 + $0x10] sm:$0xff]   ;;  %v1316_v7 = vld [vmem:[%s1714_s5 + $0x18] sm:$0xff]  }
  0x29   :  { %1093 = vmatpush3.bf16.msra.mxu0 %v1270_v21  ;;  %v1317_v8 = vld [vmem:[%s1714_s5 + $0x20] sm:$0xff]   ;;  %v1318_v9 = vld [vmem:[%s1714_s5 + $0x28] sm:$0xff]   ;;  %v1320_v38 = vld [vmem:[%s1714_s5 + $0x38] sm:$0xff]  }
  0x2a   :  { %1094 = vmatprep.subr.bf16.mxu0 %v1273_v24  ;;  %v997_v11 = vld [vmem:[%s1711_s2] ss:$0 sm:$0xff] }
  0x2b   :  { %1115 = vmatpush3.bf16.msra.mxu1 %v1272_v23 }
  0x2c   :  { %1116 = vmatprep.subr.bf16.mxu1 %v1275_v26 }
  0x2d   :  { %1095 = vmatpush3.bf16.msra.mxu0 %v1274_v25 }
  0x2e   :  { %1096 = vmatprep.subr.bf16.mxu0 %v1277_v28 }
  0x2f   :  { %1117 = vmatpush3.bf16.msra.mxu1 %v1276_v27 }
  0x30   :  { %1118 = vmatprep.subr.bf16.mxu1 %v1279_v30 }
  0x31   :  { %1097 = vmatpush3.bf16.msra.mxu0 %v1278_v29 }
  0x32   :  { %1126 = vmatprep.subr.bf16.mxu0 %v1283_v35 }
  0x33   :  { %1119 = vmatpush3.bf16.msra.mxu1 %v1282_v34 }
  0x34   :  { %512 = vmatmul.mubr.bf16.vlgmr.msra.gmra.mrb[0].mxu0 %v998_v32  ;;  %1177 = vmatprep.subr.bf16.mxu1 %v1380_v43 }
  0x35   :  { %1127 = vmatpush3.bf16.msra.mxu0 %v1286_v39  ;;  %591 = vmatprep.mubr.bf16.mxu0 %v1003_v53  ;;  %v1321_v39 = vld [vmem:[#allocation2] sm:$0xff]  }
  0x36   :  { %552 = vmatmul.mubr.bf16.vlgmr.msra.gmra.mrb[0].mxu1 %v1000_v37  ;;  %1128 = vmatprep.subr.bf16.mxu0 %v1287_v40  ;;  %v1319_v37 = vld [vmem:[%s1714_s5 + $0x30] sm:$0xff]  }
  0x37   :  { %1179 = vmatprep.mubr.msk.bf16.mxu1 %vm1381_vm0, %v1380_v43  ;;  %1178 = vmatpush3.bf16.msra.mxu1 %v1301_v50  ;;  %v1322_v40 = vld [vmem:[#allocation2 + $0x8] sm:$0xff]  }
  0x38   :  { %1183 = vmatprep.subr.bf16.mxu1 %v1380_v43 }
  0x39   :  { %1129 = vmatpush3.bf16.msra.mxu0 %v1288_v41  ;;  %v1323_v41 = vld [vmem:[#allocation2 + $0x10] sm:$0xff]  }
  0x3a   :  { %1130 = vmatprep.subr.bf16.mxu0 %v1289_v42  ;;  %v1324_v42 = vld [vmem:[#allocation2 + $0x18] sm:$0xff]  }
  0x3d   :  { %1131 = vmatpush3.bf16.msra.mxu0 %v1290_v44  ;;  %v1325_v44 = vld [vmem:[#allocation2 + $0x20] sm:$0xff]  }
  0x3e   :  { %1132 = vmatprep.subr.bf16.mxu0 %v1291_v45  ;;  %1180 = vmatmul.mubr.msk.bf16.vlgmr.msra.gmra.mrb[4].mxu1 %vm475_vm1, %v1304_v54  ;;  %v1326_v45 = vld [vmem:[#allocation2 + $0x28] sm:$0xff]  }
  0x3f   :  { %1199 = vmatprep.mubr.msk.bf16.mxu1 %vm1381_vm0, %v1380_v43  ;;  %1184 = vmatpush3.bf16.msra.mxu1 %v1305_v60 }
  0x40   :  { %1185 = vmatprep.subr.bf16.mxu1 %v1380_v43 }
  0x41   :  { %1133 = vmatpush3.bf16.msra.mxu0 %v1292_v46  ;;  %v1055_v46 = vld [vmem:[%s1713_s4] ss:$0 sm:$0xff] }
  0x42   :  { %1134 = vmatprep.subr.bf16.mxu0 %v1293_v47 }
  0x43   :  { %1186 = vmatpush3.bf16.msra.mxu1 %v1306_v61 }
  0x44   :  { %1187 = vmatprep.subr.bf16.mxu1 %v1380_v43 }
  0x45   :  { %1135 = vmatpush3.bf16.msra.mxu0 %v1294_v48 }
  0x46   :  { %1136 = vmatprep.subr.bf16.mxu0 %v1295_v49 }
  0x47   :  { %1188 = vmatpush3.bf16.msra.mxu1 %v1307_v62 }
  0x48   :  { %1189 = vmatprep.subr.bf16.mxu1 %v1380_v43 }
  0x49   :  { %1137 = vmatpush3.bf16.msra.mxu0 %v1296_v52 }
  0x4a   :  { %1138 = vmatprep.subr.bf16.mxu0 %v1297_v55  ;;  %v1327_v55 = vld [vmem:[#allocation2 + $0x30] sm:$0xff]  }
  0x4b   :  { %1190 = vmatpush3.bf16.msra.mxu1 %v1308_v63 }
  0x4c   :  { %1191 = vmatprep.subr.bf16.mxu1 %v1380_v43 }
  0x4d   :  { %1139 = vmatpush3.bf16.msra.mxu0 %v1298_v56  ;;  %v1328_v56 = vld [vmem:[#allocation2 + $0x38] sm:$0xff]  }
  0x4e   :  { %1140 = vmatprep.subr.bf16.mxu0 %v1299_v57  ;;  %v1064_v57 = vld [vmem:[%s1715_s6] ss:$0 sm:$0xff]  ;;  %s1351_s6 = scalar_lea.vmem %s989_s30, 128 }
  0x4f   :  { %1192 = vmatpush3.bf16.msra.mxu1 %v1309_v0  ;;  %p1352_p8 = scmp.ne.s32.totalorder %s989_s30, %s1351_s6  ;;  %p1357_p10 = scmp.lt.s32.totalorder %s1351_s6, %s1351_s6 }
  0x50   :  { %1193 = vmatprep.subr.bf16.mxu1 %v1380_v43 }
  0x51   :  { %1141 = vmatpush3.bf16.msra.mxu0 %v1300_v58  ;;  %p1358_p11 = por %p1357_p10, %p1356_p9 }
  0x52   :  { %1203 = vmatprep.subr.bf16.mxu0 %v1380_v43 }
  0x53   :  { %1194 = vmatpush3.bf16.msra.mxu1 %v1310_v1  ;;  %p1359_p12 = pnand %p1358_p11, %p1352_p8 }
  0x54   :  { %592 = vmatmul.mubr.bf16.vlgmr.msra.gmra.mrb[4].mxu0 %v1002_v59  ;;  %1195 = vmatprep.subr.bf16.mxu1 %v1380_v43 }
  0x55   :  { %1219 = vmatprep.mubr.msk.bf16.mxu0 %vm1381_vm0, %v1380_v43  ;;  %1204 = vmatpush3.bf16.msra.mxu0 %v1313_v4 }
  0x56   :  { %1205 = vmatprep.subr.bf16.mxu0 %v1380_v43 }
  0x57   :  { %1196 = vmatpush3.bf16.msra.mxu1 %v1311_v2  ;;  %v1073_v2 = vld [vmem:[%s1717_s8] ss:$0 sm:$0xff] }
  0x58   :  { %1197 = vmatprep.subr.bf16.mxu1 %v1380_v43 }
  0x59   :  { %1206 = vmatpush3.bf16.msra.mxu0 %v1314_v5 }
  0x5a   :  { %1207 = vmatprep.subr.bf16.mxu0 %v1380_v43 }
  0x5b   :  { %1198 = vmatpush3.bf16.msra.mxu1 %v1312_v3 }
  0x5c   :  { %1223 = vmatprep.subr.bf16.mxu1 %v1380_v43 }
  0x5d   :  { %1208 = vmatpush3.bf16.msra.mxu0 %v1315_v6 }
  0x5e   :  { %1209 = vmatprep.subr.bf16.mxu0 %v1380_v43 }
  0x61   :  { %1210 = vmatpush3.bf16.msra.mxu0 %v1316_v7 }
  0x62   :  { %1211 = vmatprep.subr.bf16.mxu0 %v1380_v43 }
  0x65   :  { %1212 = vmatpush3.bf16.msra.mxu0 %v1317_v8 }
  0x66   :  { %1213 = vmatprep.subr.bf16.mxu0 %v1380_v43 }
  0x69   :  { %1214 = vmatpush3.bf16.msra.mxu0 %v1318_v9 }
  0x6a   :  { %1215 = vmatprep.subr.bf16.mxu0 %v1380_v43 }
  0x6d   :  { %1216 = vmatpush3.bf16.msra.mxu0 %v1319_v37 }
  0x6e   :  { %1217 = vmatprep.subr.bf16.mxu0 %v1380_v43 }
  0x71   :  { %1218 = vmatpush3.bf16.msra.mxu0 %v1320_v38 }
 0x107   :  { %v1098_v10 = vpop.f32.mrb[0].mxu0 }
 0x108   :  { %v1099_v12 = vpop.f32.mrb[1].mxu0 }
 0x109   :  { %v1100_v13 = vadd.f32 %v1099_v12, %v1098_v10  ;;  %v1101_v14 = vpop.f32.mrb[2].mxu0  ;;  %v1120_v15 = vpop.f32.mrb[0].mxu1 }
 0x10a   :  { %v1102_v16 = vpop.f32.mrb[3].mxu0  ;;  %v1121_v17 = vpop.f32.mrb[1].mxu1 }
 0x10b   :  { %v514_v18 = vadd.f32 %v1100_v13, %v997_v11  ;;  %v1122_v19 = vadd.f32 %v1121_v17, %v1120_v15  ;;  %v1123_v20 = vpop.f32.mrb[2].mxu1 }
 0x10c   :  { %v1124_v21 = vpop.f32.mrb[3].mxu1 }
 0x10d   :  { %v554_v22 = vadd.f32 %v1122_v19, %v514_v18 }
 0x111   :  { %v633_v23 = vpop.f32.mrb[4].mxu1 }
 0x112   :  { %v1181_v24 = vpop.f32.mrb[5].mxu1 }
 0x113   :  { %v636_v25 = vpop.f32.mrb[6].mxu1 }
 0x114   :  { %v1182_v26 = vpop.f32.mrb[7].mxu1 }
 0x127   :  { %v1142_v27 = vpop.f32.mrb[4].mxu0 }
 0x128   :  { %v1143_v28 = vpop.f32.mrb[5].mxu0 }
 0x129   :  { %v1144_v29 = vadd.f32 %v1143_v28, %v1142_v27  ;;  %v1145_v30 = vpop.f32.mrb[6].mxu0 }
 0x12a   :  { %v1146_v31 = vpop.f32.mrb[7].mxu0 }
 0x12b   :  { %v594_v32 = vadd.f32 %v1144_v29, %v554_v22 }
 0x12d   :  { %v634_v33 = vadd.f32 %v633_v23, %v594_v32 }
 0x12f   :  { %v639_v34 = vmax.f32 %v634_v33, 0.0 }
 0x131   :  { %v640_v35 = vmin.f32 %v639_v34, 6.0 }
 0x133   :  { %v641_v36 = vpack.c.bf16 %v640_v35, %v640_v35 }
 0x135   :  { %1200 = vmatmul.mubr.bf16.vlgmr.msra.gmra.mrb[8].mxu1 %v641_v36 }
 0x136   :  { %1239 = vmatprep.mubr.msk.bf16.mxu1 %vm1381_vm0, %v1380_v43  ;;  %1224 = vmatpush3.bf16.msra.mxu1 %v1321_v39 }
 0x137   :  { %1225 = vmatprep.subr.bf16.mxu1 %v1380_v43 }
 0x13a   :  { %1226 = vmatpush3.bf16.msra.mxu1 %v1322_v40 }
 0x13b   :  { %1227 = vmatprep.subr.bf16.mxu1 %v1380_v43 }
 0x13e   :  { %1228 = vmatpush3.bf16.msra.mxu1 %v1323_v41 }
 0x13f   :  { %1229 = vmatprep.subr.bf16.mxu1 %v1380_v43 }
 0x142   :  { %1230 = vmatpush3.bf16.msra.mxu1 %v1324_v42 }
 0x143   :  { %1231 = vmatprep.subr.bf16.mxu1 %v1380_v43 }
 0x146   :  { %1232 = vmatpush3.bf16.msra.mxu1 %v1325_v44 }
 0x147   :  { %1233 = vmatprep.subr.bf16.mxu1 %v1380_v43 }
 0x14a   :  { %1234 = vmatpush3.bf16.msra.mxu1 %v1326_v45 }
 0x14b   :  { %1235 = vmatprep.subr.bf16.mxu1 %v1380_v43 }
 0x14e   :  { %1236 = vmatpush3.bf16.msra.mxu1 %v1327_v55 }
 0x14f   :  { %1237 = vmatprep.subr.bf16.mxu1 %v1380_v43 }
 0x152   :  { %1238 = vmatpush3.bf16.msra.mxu1 %v1328_v56 }
 0x208   :  { %v747_v47 = vpop.f32.mrb[8].mxu1 }
 0x209   :  { %v748_v48 = vadd.f32 %v1055_v46, %v747_v47  ;;  %v1201_v49 = vpop.f32.mrb[9].mxu1 }
 0x20a   :  { %v750_v50 = vpop.f32.mrb[10].mxu1 }
 0x20b   :  { %v753_v51 = vmax.f32 %v748_v48, 0.0  ;;  %v1202_v52 = vpop.f32.mrb[11].mxu1 }
 0x20d   :  { %v754_v53 = vmin.f32 %v753_v51, 6.0 }
 0x20f   :  { %v755_v54 = vpack.c.bf16 %v754_v53, %v754_v53 }
 0x211   :  { %1220 = vmatmul.mubr.bf16.vlgmr.msra.gmra.mrb[8].mxu0 %v755_v54 }
 0x2e4   :  { %v861_v58 = vpop.f32.mrb[8].mxu0 }
 0x2e5   :  { %v862_v59 = vadd.f32 %v1064_v57, %v861_v58  ;;  %v1221_v60 = vpop.f32.mrb[9].mxu0 }
 0x2e6   :  { %v864_v61 = vpop.f32.mrb[10].mxu0 }
 0x2e7   :  { %v867_v62 = vmax.f32 %v862_v59, 0.0  ;;  %v1222_v63 = vpop.f32.mrb[11].mxu0 }
 0x2e9   :  { %v868_v0 = vmin.f32 %v867_v62, 6.0 }
 0x2eb   :  { %v869_v1 = vpack.c.bf16 %v868_v0, %v868_v0 }
 0x2ed   :  { %1240 = vmatmul.mubr.bf16.vlgmr.msra.gmra.mrb[12].mxu1 %v869_v1 }
 0x3c0   :  { %v975_v43 = vpop.f32.mrb[12].mxu1 }
 0x3c1   :  { %v976_v3 = vadd.f32 %v1073_v2, %v975_v43  ;;  %v1241_v4 = vpop.f32.mrb[13].mxu1 }
 0x3c2   :  { %v978_v5 = vpop.f32.mrb[14].mxu1 }
 0x3c3   :  { %981 = vst [vmem:[#allocation5] sm:$0xff] %v976_v3  ;;  %v1242_v6 = vpop.f32.mrb[15].mxu1 }
 0x3c4   :  { %1362 = shalt.err (!%p1359_p12)
}
 0x3c5   :  { %s1363_s8 = scalar_lea.hbm %s1718_s9, 128 }
 0x3c6   :  { %p1364_p13 = scmp.ne.s32.totalorder %s1718_s9, %s1363_s8  ;;  %p1367_p0 = scmp.lt.u32.totalorder %s1363_s8, %s1718_s9 }
 0x3c8   :  { %p1369_p1 = pnand %p1367_p0, %p1364_p13 }
 0x3ca   :  { %1372 = shalt.err (!%p1369_p1)
}
 0x3cb   :  { %991 = dma.vmem_to_hbm [thread:$0]  %s989_s30, 128, %s1718_s9, [#allocation4]  }
 0x3cc   :  { %1375 = dma.done.wait [#allocation4], 128  }
 0x3cd   :  { %1376 = vsyncadd [#allocation4], 4294967168 }
 0x3ce   :  { %995 = vsyncpa [#allocation3], 1 }
 0x3cf   :  { %996 = vsyncpa [#allocation4], 1 }

</bundles_post_ra>
